<compile_context>
chip_gen: v7x
topology: tpu7x:2x2x1
jax: 0.10.0
libtpu: 0.0.40
codegen_flags: <defaults>
</compile_context>

<pallas_src>
import jax
import jax.numpy as jnp
from jax import lax
from jax.experimental import pallas as pl
from jax.experimental.pallas import tpu as pltpu

ENC_RNN_SIZE = 512          # fixed in the PyTorch module
DEC_RNN_SIZE = 256          # opt.dec_rnn_size (multiple of 128)


def _dec_init_kernel(x_ref, w_ref, b_ref, o_ref):
    # x_ref: (tm, K)   w_ref: (N, K) (PyTorch Linear layout)   b_ref: (1, N)
    # out = tanh(x @ W^T + b); contraction over K of both operands so the MXU
    # takes the "transpose" for free and no wrapper transpose is needed.
    acc = lax.dot_general(
        x_ref[...], w_ref[...],
        dimension_numbers=(((1,), (1,)), ((), ())),
        preferred_element_type=jnp.float32,
    )
    o_ref[...] = jnp.tanh(acc + b_ref[...]).astype(o_ref.dtype)


def dec_init_forward(x, weight, bias, *, tm=None):
    """tanh(x @ weight.T + bias), matching nn.Linear + Tanh semantics.

    x:      (B, ENC_RNN_SIZE)
    weight: (DEC_RNN_SIZE, ENC_RNN_SIZE)   -- PyTorch Linear layout (N, K)
    bias:   (DEC_RNN_SIZE,)
    """
    B, K = x.shape
    N, Kw = weight.shape
    assert K == Kw, "weight in-features must match x features"
    assert bias.shape == (N,)

    # Batch tile: fill the MXU as much as the batch allows (cap at 256 rows);
    # for small batches (e.g. B=8) the whole batch is a single tile.
    if tm is None:
        tm = min(B, 256)
    assert B % tm == 0, "batch must be a multiple of the batch tile"

    b2 = bias.reshape(1, N)             # (1, N) so it lives on the lane axis
    grid = (B // tm,)                   # only the batch axis remains

    itemsize = jnp.dtype(x.dtype).itemsize
    cost = pl.CostEstimate(
        flops=2 * B * K * N,
        transcendentals=B * N,
        bytes_accessed=(B * K + N * K + N + B * N) * itemsize,
    )

    return pl.pallas_call(
        _dec_init_kernel,
        out_shape=jax.ShapeDtypeStruct((B, N), x.dtype),
        grid_spec=pltpu.PrefetchScalarGridSpec(
            num_scalar_prefetch=0,
            grid=grid,
            in_specs=[
                pl.BlockSpec((tm, K), lambda i: (i, 0)),   # x batch tile
                pl.BlockSpec((N, K), lambda i: (0, 0)),    # full weight slab
                pl.BlockSpec((1, N), lambda i: (0, 0)),    # bias, one block
            ],
            out_specs=pl.BlockSpec((tm, N), lambda i: (i, 0)),
        ),
        compiler_params=pltpu.CompilerParams(
            dimension_semantics=("parallel",)
        ),
        cost_estimate=cost,
    )(x, weight, b2)


if __name__ == "__main__":
    key = jax.random.PRNGKey(0)
    k_x, k_w, k_b = jax.random.split(key, 3)

    batch = 8
    x = jax.random.normal(k_x, (batch, ENC_RNN_SIZE), dtype=jnp.float32)

    # Deterministic parameter init (mimics nn.Linear's uniform(-1/sqrt(in), 1/sqrt(in))).
    bound = 1.0 / jnp.sqrt(ENC_RNN_SIZE)
    weight = jax.random.uniform(
        k_w, (DEC_RNN_SIZE, ENC_RNN_SIZE), minval=-bound, maxval=bound,
        dtype=jnp.float32,
    )
    bias = jax.random.uniform(
        k_b, (DEC_RNN_SIZE,), minval=-bound, maxval=bound, dtype=jnp.float32
    )

    out = dec_init_forward(x, weight, bias)
    out = jax.block_until_ready(out)

    # Correctness check against plain-JAX reference.
    ref = jnp.tanh(x @ weight.T + bias)
    assert out.shape == (batch, DEC_RNN_SIZE)
    assert jnp.allclose(out, ref, atol=1e-5, rtol=1e-5)

    print("KERNEL_OK")
</pallas_src>

<mosaic_0001>
module attributes {stable_mosaic.version = 11 : i64} {
  func.func @_dec_init_kernel(%arg0: i32, %arg1: memref<8x512xf32, #tpu.memory_space<vmem>>, %arg2: memref<256x512xf32, #tpu.memory_space<vmem>>, %arg3: memref<1x256xf32, #tpu.memory_space<vmem>>, %arg4: memref<8x256xf32, #tpu.memory_space<vmem>>) attributes {dimension_semantics = [#tpu.dimension_semantics<parallel>], iteration_bounds = array<i64: 1>, scalar_prefetch = 0 : i64, scratch_operands = 0 : i64, tpu.core_type = #tpu.core_type<tc>, window_params = [{transform_indices = @transform_0, window_bounds = array<i64: 8, 512>}, {pipeline_mode = #tpu.pipeline_mode<synchronous>, transform_indices = @transform_1, window_bounds = array<i64: 256, 512>}, {pipeline_mode = #tpu.pipeline_mode<synchronous>, transform_indices = @transform_2, window_bounds = array<i64: 1, 256>}, {transform_indices = @transform_3, window_bounds = array<i64: 8, 256>}]} {
    %c0 = arith.constant 0 : index
    %c0_0 = arith.constant 0 : index
    %0 = vector.load %arg1[%c0, %c0_0] : memref<8x512xf32, #tpu.memory_space<vmem>>, vector<8x512xf32>
    %c0_1 = arith.constant 0 : index
    %c0_2 = arith.constant 0 : index
    %1 = vector.load %arg2[%c0_1, %c0_2] : memref<256x512xf32, #tpu.memory_space<vmem>>, vector<256x512xf32>
    %cst = arith.constant dense<0.000000e+00> : vector<8x256xf32>
    %2 = tpu.matmul %0, %1, %cst {dimension_numbers = #tpu.dot_dimension_numbers<[1], [1], [0], [0], [0, 0, 1, 0], [], []>} : vector<8x512xf32>, vector<256x512xf32>, vector<8x256xf32> -> vector<8x256xf32>
    %c0_3 = arith.constant 0 : index
    %c0_4 = arith.constant 0 : index
    %3 = vector.load %arg3[%c0_3, %c0_4] : memref<1x256xf32, #tpu.memory_space<vmem>>, vector<1x256xf32>
    %4 = vector.broadcast %3 : vector<1x256xf32> to vector<8x256xf32>
    %5 = arith.addf %2, %4 : vector<8x256xf32>
    %6 = math.tanh %5 : vector<8x256xf32>
    %c0_5 = arith.constant 0 : index
    %c0_6 = arith.constant 0 : index
    %7 = vector.load %arg4[%c0_5, %c0_6] : memref<8x256xf32, #tpu.memory_space<vmem>>, vector<8x256xf32>
    tpu.vector_store %arg4[%c0_5, %c0_6], %6 {strides = array<i32>} : memref<8x256xf32, #tpu.memory_space<vmem>>, vector<8x256xf32>,
    return
  }
  func.func @transform_0(%arg0: i32) -> (i32, i32) {
    %c0_i32 = arith.constant 0 : i32
    %c0_i32_0 = arith.constant 0 : i32
    return %arg0, %c0_i32 : i32, i32
  }
  func.func @transform_1(%arg0: i32) -> (i32, i32) {
    %c0_i32 = arith.constant 0 : i32
    %c0_i32_0 = arith.constant 0 : i32
    %c0_i32_1 = arith.constant 0 : i32
    return %c0_i32, %c0_i32_0 : i32, i32
  }
  func.func @transform_2(%arg0: i32) -> (i32, i32) {
    %c0_i32 = arith.constant 0 : i32
    %c0_i32_0 = arith.constant 0 : i32
    %c0_i32_1 = arith.constant 0 : i32
    return %c0_i32, %c0_i32_0 : i32, i32
  }
  func.func @transform_3(%arg0: i32) -> (i32, i32) {
    %c0_i32 = arith.constant 0 : i32
    %c0_i32_0 = arith.constant 0 : i32
    return %arg0, %c0_i32 : i32, i32
  }
}

</mosaic_0001>

<bundles_post_ra>
// kernel: tpu_custom_call.1
= control target key start
LH: loop header
LB: loop body
LE: loop exit
PB: predicated region body
PF: predicated region fallthrough
CT: control target
= control target key end

     0   :  { %8 = vsyncpa [#allocation3], 0  ;;  %s631_s0 = inlined_call_operand.hbm [shape: f32[8,512], index: 0, kind: input, shape index: {}]   ;;  %s632_s1 = inlined_call_operand.hbm [shape: f32[256,512], index: 1, kind: input, shape index: {}]   ;;  %s633_s2 = inlined_call_operand.vmem [shape: f32[1,256], index: 2, kind: input, shape index: {}]   ;;  %s634_s3 = inlined_call_operand.hbm [shape: f32[8,256], index: 3, kind: output, shape index: {}]  }
   0x1   :  { %9 = vsyncpa [#allocation6], 0 }
   0x2   :  { %10 = vsyncpa [#allocation4], 0  ;;  %s560_s12 = smov [#allocation2]   ;;  %s561_s14 = smov [#allocation5]  }
   0x3   :  { %s17_s13 = sshll.u32 %s560_s12, 4  ;;  %s26_s15 = sshll.u32 %s561_s14, 4  ;;  %s18_s13 = int_to_ptr.vmem [resolvable:$true] %s17_s13  ;;  %s585_s15 = int_to_ptr.vmem [resolvable:$true] %s26_s15 }
   0x4   :  { %s488_s18 = scalar_lea.hbm %s631_s0, 512 }
   0x5   :  { %p489_p0 = scmp.ne.s32.totalorder %s631_s0, %s488_s18  ;;  %p492_p1 = scmp.lt.u32.totalorder %s488_s18, %s631_s0 }
   0x7   :  { %p494_p2 = pnand %p492_p1, %p489_p0 }
   0x9   :  { %497 = shalt.err (!%p494_p2)
}
   0xa   :  { %s498_s23 = scalar_lea.vmem %s18_s13, 512  ;;  %p503_p4 = scmp.lt.s32.totalorder %s18_s13, %s18_s13 }
   0xb   :  { %p499_p3 = scmp.ne.s32.totalorder %s18_s13, %s498_s23  ;;  %p504_p5 = scmp.lt.s32.totalorder %s498_s23, %s498_s23 }
   0xd   :  { %p505_p6 = por %p504_p5, %p503_p4 }
   0xf   :  { %p506_p7 = pnand %p505_p6, %p499_p3 }
  0x11   :  { %509 = shalt.err (!%p506_p7)
}
  0x12   :  { %20 = dma.hbm_to_vmem [thread:$0]  %s631_s0, 512, %s18_s13, [#allocation3]  }
  0x13   :  { %s510_s28 = scalar_lea.hbm %s632_s1, 16384 }
  0x14   :  { %p511_p8 = scmp.ne.s32.totalorder %s632_s1, %s510_s28  ;;  %p514_p9 = scmp.lt.u32.totalorder %s510_s28, %s632_s1 }
  0x16   :  { %p516_p10 = pnand %p514_p9, %p511_p8 }
  0x18   :  { %519 = shalt.err (!%p516_p10)
}
  0x19   :  { %s520_s6 = scalar_lea.vmem %s585_s15, 16384  ;;  %p525_p12 = scmp.lt.s32.totalorder %s585_s15, %s585_s15 }
  0x1a   :  { %p521_p11 = scmp.ne.s32.totalorder %s585_s15, %s520_s6  ;;  %p526_p13 = scmp.lt.s32.totalorder %s520_s6, %s520_s6 }
  0x1c   :  { %p527_p0 = por %p526_p13, %p525_p12 }
  0x1e   :  { %p528_p1 = pnand %p527_p0, %p521_p11 }
  0x20   :  { %531 = shalt.err (!%p528_p1)
}
  0x21   :  { %s562_s0 = smov 512   ;;  %s563_s7 = smov 32  }
  0x22   :  { %32 = dma.hbm_to_vmem [thread:$0]  %s632_s1, 16384, %s585_s15, [#allocation6], %s562_s0, %s562_s0, %s563_s7  }
  0x23   :  { %554 = dma.done.wait [#allocation3], 512  }
  0x24   :  { %555 = vsyncadd [#allocation3], 4294966784 }
  0x25   :  { %556 = dma.done.wait [#allocation6], 16384  }
  0x26   :  { %557 = vsyncadd [#allocation6], 4294950912  ;;  %v46_v0 = vld [vmem:[#allocation5 + $0x8] sm:$0xff]  ;;  %v45_v2 = vld [vmem:[#allocation5] sm:$0xff]  ;;  %s564_s11 = smov [#allocation7]  }
  0x27   :  { %v50_v1 = vld [vmem:[#allocation5 + $0x28] sm:$0xff]  ;;  %v49_v4 = vld [vmem:[#allocation5 + $0x20] sm:$0xff]  ;;  %v48_v5 = vld [vmem:[#allocation5 + $0x18] sm:$0xff]  ;;  %s337_s12 = sshll.u32 %s564_s11, 4  ;;  %s338_s12 = int_to_ptr.vmem [resolvable:$true] %s337_s12 }
  0x28   :  { %v347_v3 = vpack.c.bf16 %v50_v1, %v46_v0  ;;  %v52_v6 = vld [vmem:[#allocation5 + $0x38] sm:$0xff]  ;;  %v349_v7 = vpack.c.bf16 %v49_v4, %v45_v2  ;;  %v47_v9 = vld [vmem:[#allocation5 + $0x10] sm:$0xff]  ;;  %v54_v11 = vld [vmem:[#allocation5 + $0x48] sm:$0xff]  ;;  %p537_p3 = scmp.lt.s32.totalorder %s338_s12, %s338_s12 }
  0x29   :  { %v411_v8 = vpack.c.bf16 %v52_v6, %v48_v5  ;;  %v51_v10 = vld [vmem:[#allocation5 + $0x30] sm:$0xff]  ;;  %v58_v13 = vld [vmem:[#allocation5 + $0x68] sm:$0xff]  ;;  %v56_v15 = vld [vmem:[#allocation5 + $0x58] sm:$0xff] }
  0x2a   :  { %348 = vmatprep.subr.bf16.mxu1 %v347_v3  ;;  %v413_v12 = vpack.c.bf16 %v51_v10, %v47_v9  ;;  %v351_v14 = vpack.c.bf16 %v58_v13, %v54_v11  ;;  %v60_v16 = vld [vmem:[#allocation5 + $0x78] sm:$0xff]  ;;  %v53_v17 = vld [vmem:[#allocation5 + $0x40] sm:$0xff]  ;;  %v55_v20 = vld [vmem:[#allocation5 + $0x50] sm:$0xff] }
  0x2b   :  { %350 = vmatpush1.bf16.xpose.msra.mxu1 %v349_v7  ;;  %412 = vmatprep.subr.bf16.mxu0 %v411_v8  ;;  %v57_v18 = vld [vmem:[#allocation5 + $0x60] sm:$0xff]  ;;  %v415_v19 = vpack.c.bf16 %v60_v16, %v56_v15  ;;  %v59_v21 = vld [vmem:[#allocation5 + $0x70] sm:$0xff]  ;;  %v62_v22 = vld [vmem:[#allocation5 + $0x88] sm:$0xff] }
  0x2c   :  { %414 = vmatpush1.bf16.xpose.msra.mxu0 %v413_v12  ;;  %352 = vmatprep.subr.bf16.mxu1 %v351_v14  ;;  %v66_v23 = vld [vmem:[#allocation5 + $0xa8] sm:$0xff]  ;;  %v64_v24 = vld [vmem:[#allocation5 + $0x98] sm:$0xff]  ;;  %v353_v26 = vpack.c.bf16 %v57_v18, %v53_v17  ;;  %v417_v27 = vpack.c.bf16 %v59_v21, %v55_v20  ;;  %v61_v30 = vld [vmem:[#allocation5 + $0x80] sm:$0xff] }
  0x2d   :  { %416 = vmatprep.subr.bf16.mxu0 %v415_v19  ;;  %v68_v25 = vld [vmem:[#allocation5 + $0xb8] sm:$0xff]  ;;  %v355_v28 = vpack.c.bf16 %v66_v23, %v62_v22  ;;  %v65_v31 = vld [vmem:[#allocation5 + $0xa0] sm:$0xff]  ;;  %v63_v32 = vld [vmem:[#allocation5 + $0x90] sm:$0xff] }
  0x2e   :  { %v419_v29 = vpack.c.bf16 %v68_v25, %v64_v24  ;;  %v67_v33 = vld [vmem:[#allocation5 + $0xb0] sm:$0xff]  ;;  %v70_v34 = vld [vmem:[#allocation5 + $0xc8] sm:$0xff]  ;;  %v72_v36 = vld [vmem:[#allocation5 + $0xd8] sm:$0xff]  ;;  %v357_v38 = vpack.c.bf16 %v65_v31, %v61_v30 }
  0x2f   :  { %v74_v35 = vld [vmem:[#allocation5 + $0xe8] sm:$0xff]  ;;  %v76_v37 = vld [vmem:[#allocation5 + $0xf8] sm:$0xff]  ;;  %v421_v39 = vpack.c.bf16 %v67_v33, %v63_v32  ;;  %v69_v42 = vld [vmem:[#allocation5 + $0xc0] sm:$0xff] }
  0x30   :  { %v359_v40 = vpack.c.bf16 %v74_v35, %v70_v34  ;;  %v423_v41 = vpack.c.bf16 %v76_v37, %v72_v36  ;;  %v73_v43 = vld [vmem:[#allocation5 + $0xe0] sm:$0xff]  ;;  %v71_v44 = vld [vmem:[#allocation5 + $0xd0] sm:$0xff]  ;;  %v78_v46 = vld [vmem:[#allocation5 + $0x108] sm:$0xff] }
  0x31   :  { %v75_v45 = vld [vmem:[#allocation5 + $0xf0] sm:$0xff]  ;;  %v82_v47 = vld [vmem:[#allocation5 + $0x128] sm:$0xff]  ;;  %v80_v48 = vld [vmem:[#allocation5 + $0x118] sm:$0xff]  ;;  %v361_v50 = vpack.c.bf16 %v73_v43, %v69_v42 }
  0x32   :  { %v84_v49 = vld [vmem:[#allocation5 + $0x138] sm:$0xff]  ;;  %v425_v51 = vpack.c.bf16 %v75_v45, %v71_v44  ;;  %v363_v52 = vpack.c.bf16 %v82_v47, %v78_v46  ;;  %v77_v54 = vld [vmem:[#allocation5 + $0x100] sm:$0xff]  ;;  %v79_v56 = vld [vmem:[#allocation5 + $0x110] sm:$0xff] }
  0x33   :  { %354 = vmatpush1.bf16.xpose.msra.mxu1 %v353_v26  ;;  %v427_v53 = vpack.c.bf16 %v84_v49, %v80_v48  ;;  %v81_v55 = vld [vmem:[#allocation5 + $0x120] sm:$0xff]  ;;  %v83_v57 = vld [vmem:[#allocation5 + $0x130] sm:$0xff]  ;;  %v86_v58 = vld [vmem:[#allocation5 + $0x148] sm:$0xff] }
  0x34   :  { %418 = vmatpush1.bf16.xpose.msra.mxu0 %v417_v27  ;;  %356 = vmatprep.subr.bf16.mxu1 %v355_v28  ;;  %v90_v59 = vld [vmem:[#allocation5 + $0x168] sm:$0xff]  ;;  %v88_v60 = vld [vmem:[#allocation5 + $0x158] sm:$0xff]  ;;  %v365_v62 = vpack.c.bf16 %v81_v55, %v77_v54  ;;  %v429_v63 = vpack.c.bf16 %v83_v57, %v79_v56  ;;  %v85_v2 = vld [vmem:[#allocation5 + $0x140] sm:$0xff] }
  0x35   :  { %420 = vmatprep.subr.bf16.mxu0 %v419_v29  ;;  %v92_v61 = vld [vmem:[#allocation5 + $0x178] sm:$0xff]  ;;  %v367_v0 = vpack.c.bf16 %v90_v59, %v86_v58  ;;  %v89_v3 = vld [vmem:[#allocation5 + $0x160] sm:$0xff]  ;;  %v87_v4 = vld [vmem:[#allocation5 + $0x150] sm:$0xff] }
  0x36   :  { %v431_v1 = vpack.c.bf16 %v92_v61, %v88_v60  ;;  %v91_v5 = vld [vmem:[#allocation5 + $0x170] sm:$0xff]  ;;  %v94_v6 = vld [vmem:[#allocation5 + $0x188] sm:$0xff]  ;;  %v96_v8 = vld [vmem:[#allocation5 + $0x198] sm:$0xff]  ;;  %v369_v10 = vpack.c.bf16 %v89_v3, %v85_v2 }
  0x37   :  { %v98_v7 = vld [vmem:[#allocation5 + $0x1a8] sm:$0xff]  ;;  %v100_v9 = vld [vmem:[#allocation5 + $0x1b8] sm:$0xff]  ;;  %v433_v11 = vpack.c.bf16 %v91_v5, %v87_v4  ;;  %v93_v16 = vld [vmem:[#allocation5 + $0x180] sm:$0xff] }
  0x38   :  { %v371_v12 = vpack.c.bf16 %v98_v7, %v94_v6  ;;  %v435_v13 = vpack.c.bf16 %v100_v9, %v96_v8  ;;  %v42_v14 = vld [vmem:[#allocation2 + $0x8] sm:$0xff]  ;;  %v44_v15 = vld [vmem:[#allocation2 + $0x18] sm:$0xff]  ;;  %v97_v17 = vld [vmem:[#allocation5 + $0x1a0] sm:$0xff] }
  0x39   :  { %249 = vmatprep.mubr.f32.mxu1 %v42_v14  ;;  %320 = vmatprep.mubr.f32.mxu0 %v44_v15  ;;  %v95_v18 = vld [vmem:[#allocation5 + $0x190] sm:$0xff]  ;;  %v102_v20 = vld [vmem:[#allocation5 + $0x1c8] sm:$0xff]  ;;  %v104_v22 = vld [vmem:[#allocation5 + $0x1d8] sm:$0xff]  ;;  %v373_v24 = vpack.c.bf16 %v97_v17, %v93_v16 }
  0x3a   :  { %v99_v19 = vld [vmem:[#allocation5 + $0x1b0] sm:$0xff]  ;;  %v106_v21 = vld [vmem:[#allocation5 + $0x1e8] sm:$0xff]  ;;  %v108_v23 = vld [vmem:[#allocation5 + $0x1f8] sm:$0xff] }
  0x3b   :  { %358 = vmatpush1.bf16.xpose.msra.mxu1 %v357_v38  ;;  %v437_v25 = vpack.c.bf16 %v99_v19, %v95_v18  ;;  %v375_v26 = vpack.c.bf16 %v106_v21, %v102_v20  ;;  %v439_v27 = vpack.c.bf16 %v108_v23, %v104_v22  ;;  %v101_v28 = vld [vmem:[#allocation5 + $0x1c0] sm:$0xff]  ;;  %v103_v30 = vld [vmem:[#allocation5 + $0x1d0] sm:$0xff]  ;;  %v110_v32 = vld [vmem:[#allocation5 + $0x208] sm:$0xff] }
  0x3c   :  { %422 = vmatpush1.bf16.xpose.msra.mxu0 %v421_v39  ;;  %360 = vmatprep.subr.bf16.mxu1 %v359_v40  ;;  %v105_v29 = vld [vmem:[#allocation5 + $0x1e0] sm:$0xff]  ;;  %v107_v31 = vld [vmem:[#allocation5 + $0x1f0] sm:$0xff]  ;;  %v114_v33 = vld [vmem:[#allocation5 + $0x228] sm:$0xff] }
  0x3d   :  { %424 = vmatprep.subr.bf16.mxu0 %v423_v41  ;;  %v112_v34 = vld [vmem:[#allocation5 + $0x218] sm:$0xff]  ;;  %v377_v36 = vpack.c.bf16 %v105_v29, %v101_v28  ;;  %v441_v37 = vpack.c.bf16 %v107_v31, %v103_v30  ;;  %v379_v38 = vpack.c.bf16 %v114_v33, %v110_v32  ;;  %v109_v40 = vld [vmem:[#allocation5 + $0x200] sm:$0xff]  ;;  %v111_v42 = vld [vmem:[#allocation5 + $0x210] sm:$0xff] }
  0x3e   :  { %v116_v35 = vld [vmem:[#allocation5 + $0x238] sm:$0xff]  ;;  %v113_v41 = vld [vmem:[#allocation5 + $0x220] sm:$0xff]  ;;  %v115_v43 = vld [vmem:[#allocation5 + $0x230] sm:$0xff] }
  0x3f   :  { %v443_v39 = vpack.c.bf16 %v116_v35, %v112_v34  ;;  %v118_v44 = vld [vmem:[#allocation5 + $0x248] sm:$0xff]  ;;  %v120_v46 = vld [vmem:[#allocation5 + $0x258] sm:$0xff]  ;;  %v381_v48 = vpack.c.bf16 %v113_v41, %v109_v40  ;;  %v445_v49 = vpack.c.bf16 %v115_v43, %v111_v42  ;;  %v119_v54 = vld [vmem:[#allocation5 + $0x250] sm:$0xff] }
  0x40   :  { %v122_v45 = vld [vmem:[#allocation5 + $0x268] sm:$0xff]  ;;  %v124_v47 = vld [vmem:[#allocation5 + $0x278] sm:$0xff]  ;;  %v123_v55 = vld [vmem:[#allocation5 + $0x270] sm:$0xff] }
  0x41   :  { %v126_v56 = vld [vmem:[#allocation5 + $0x288] sm:$0xff]  ;;  %v128_v58 = vld [vmem:[#allocation5 + $0x298] sm:$0xff]  ;;  %v449_v61 = vpack.c.bf16 %v123_v55, %v119_v54  ;;  %v127_v2 = vld [vmem:[#allocation5 + $0x290] sm:$0xff] }
  0x42   :  { %v130_v57 = vld [vmem:[#allocation5 + $0x2a8] sm:$0xff]  ;;  %v132_v59 = vld [vmem:[#allocation5 + $0x2b8] sm:$0xff]  ;;  %v131_v3 = vld [vmem:[#allocation5 + $0x2b0] sm:$0xff] }
  0x43   :  { %362 = vmatpush1.bf16.xpose.msra.mxu1 %v361_v50  ;;  %v383_v50 = vpack.c.bf16 %v122_v45, %v118_v44  ;;  %v134_v4 = vld [vmem:[#allocation5 + $0x2c8] sm:$0xff]  ;;  %v136_v6 = vld [vmem:[#allocation5 + $0x2d8] sm:$0xff]  ;;  %v453_v9 = vpack.c.bf16 %v131_v3, %v127_v2  ;;  %v135_v14 = vld [vmem:[#allocation5 + $0x2d0] sm:$0xff] }
  0x44   :  { %426 = vmatpush1.bf16.xpose.msra.mxu0 %v425_v51  ;;  %364 = vmatprep.subr.bf16.mxu1 %v363_v52  ;;  %v447_v51 = vpack.c.bf16 %v124_v47, %v120_v46  ;;  %v117_v52 = vld [vmem:[#allocation5 + $0x240] sm:$0xff]  ;;  %v138_v5 = vld [vmem:[#allocation5 + $0x2e8] sm:$0xff]  ;;  %v140_v7 = vld [vmem:[#allocation5 + $0x2f8] sm:$0xff] }
  0x45   :  { %428 = vmatprep.subr.bf16.mxu0 %v427_v53  ;;  %v121_v53 = vld [vmem:[#allocation5 + $0x260] sm:$0xff]  ;;  %v139_v15 = vld [vmem:[#allocation5 + $0x2f0] sm:$0xff]  ;;  %v142_v16 = vld [vmem:[#allocation5 + $0x308] sm:$0xff] }
  0x46   :  { %v385_v60 = vpack.c.bf16 %v121_v53, %v117_v52  ;;  %v146_v17 = vld [vmem:[#allocation5 + $0x328] sm:$0xff]  ;;  %v144_v18 = vld [vmem:[#allocation5 + $0x318] sm:$0xff]  ;;  %v457_v21 = vpack.c.bf16 %v139_v15, %v135_v14  ;;  %v41_v2 = vld [vmem:[#allocation2] sm:$0xff] }
  0x47   :  { %v148_v19 = vld [vmem:[#allocation5 + $0x338] sm:$0xff]  ;;  %v395_v22 = vpack.c.bf16 %v146_v17, %v142_v16  ;;  %v150_v28 = vld [vmem:[#allocation5 + $0x348] sm:$0xff]  ;;  %v43_v3 = vld [vmem:[#allocation2 + $0x10] sm:$0xff] }
  0x48   :  { %v459_v23 = vpack.c.bf16 %v148_v19, %v144_v18  ;;  %v154_v29 = vld [vmem:[#allocation5 + $0x368] sm:$0xff]  ;;  %v152_v30 = vld [vmem:[#allocation5 + $0x358] sm:$0xff] }
  0x49   :  { %v156_v31 = vld [vmem:[#allocation5 + $0x378] sm:$0xff]  ;;  %v399_v34 = vpack.c.bf16 %v154_v29, %v150_v28  ;;  %v158_v40 = vld [vmem:[#allocation5 + $0x388] sm:$0xff] }
  0x4a   :  { %v463_v35 = vpack.c.bf16 %v156_v31, %v152_v30  ;;  %v162_v41 = vld [vmem:[#allocation5 + $0x3a8] sm:$0xff]  ;;  %v160_v42 = vld [vmem:[#allocation5 + $0x398] sm:$0xff] }
  0x4b   :  { %366 = vmatpush1.bf16.xpose.msra.mxu1 %v365_v62  ;;  %v387_v62 = vpack.c.bf16 %v130_v57, %v126_v56  ;;  %v164_v43 = vld [vmem:[#allocation5 + $0x3b8] sm:$0xff]  ;;  %v403_v46 = vpack.c.bf16 %v162_v41, %v158_v40  ;;  %v166_v52 = vld [vmem:[#allocation5 + $0x3c8] sm:$0xff] }
  0x4c   :  { %430 = vmatpush1.bf16.xpose.msra.mxu0 %v429_v63  ;;  %368 = vmatprep.subr.bf16.mxu1 %v367_v0  ;;  %v451_v63 = vpack.c.bf16 %v132_v59, %v128_v58  ;;  %v125_v0 = vld [vmem:[#allocation5 + $0x280] sm:$0xff]  ;;  %v467_v47 = vpack.c.bf16 %v164_v43, %v160_v42  ;;  %v170_v53 = vld [vmem:[#allocation5 + $0x3e8] sm:$0xff]  ;;  %v168_v54 = vld [vmem:[#allocation5 + $0x3d8] sm:$0xff] }
  0x4d   :  { %432 = vmatprep.subr.bf16.mxu0 %v431_v1  ;;  %v129_v1 = vld [vmem:[#allocation5 + $0x2a0] sm:$0xff]  ;;  %v172_v55 = vld [vmem:[#allocation5 + $0x3f8] sm:$0xff]  ;;  %v407_v58 = vpack.c.bf16 %v170_v53, %v166_v52 }
  0x4e   :  { %v389_v8 = vpack.c.bf16 %v129_v1, %v125_v0  ;;  %v471_v59 = vpack.c.bf16 %v172_v55, %v168_v54 }
  0x53   :  { %370 = vmatpush1.bf16.xpose.msra.mxu1 %v369_v10  ;;  %v391_v10 = vpack.c.bf16 %v138_v5, %v134_v4  ;;  %v175_v4 = vlaneseq }
  0x54   :  { %434 = vmatpush1.bf16.xpose.msra.mxu0 %v433_v11  ;;  %372 = vmatprep.subr.bf16.mxu1 %v371_v12  ;;  %v455_v11 = vpack.c.bf16 %v140_v7, %v136_v6  ;;  %v133_v12 = vld [vmem:[#allocation5 + $0x2c0] sm:$0xff] }
  0x55   :  { %436 = vmatprep.subr.bf16.mxu0 %v435_v13  ;;  %v137_v13 = vld [vmem:[#allocation5 + $0x2e0] sm:$0xff]  ;;  %v176_v5 = vshrl.u32 %v175_v4, 7 }
  0x56   :  { %v393_v20 = vpack.c.bf16 %v137_v13, %v133_v12  ;;  %v173_v7 = vld [vmem:[%s633_s2] sm:$0x3]  ;;  %s532_s2 = scalar_lea.vmem %s338_s12, 256 }
  0x57   :  { %v177_v6 = vsub.s32 0, %v176_v5  ;;  %p533_p2 = scmp.ne.s32.totalorder %s338_s12, %s532_s2  ;;  %p538_p4 = scmp.lt.s32.totalorder %s532_s2, %s532_s2 }
  0x59   :  { %p539_p5 = por %p538_p4, %p537_p3 }
  0x5b   :  { %374 = vmatpush1.bf16.xpose.msra.mxu1 %v373_v24  ;;  %v141_v24 = vld [vmem:[#allocation5 + $0x300] sm:$0xff]  ;;  %p540_p6 = pnand %p539_p5, %p533_p2 }
  0x5c   :  { %438 = vmatpush1.bf16.xpose.msra.mxu0 %v437_v25  ;;  %376 = vmatprep.subr.bf16.mxu1 %v375_v26  ;;  %v145_v25 = vld [vmem:[#allocation5 + $0x320] sm:$0xff]  ;;  %v143_v26 = vld [vmem:[#allocation5 + $0x310] sm:$0xff] }
  0x5d   :  { %440 = vmatprep.subr.bf16.mxu0 %v439_v27  ;;  %v147_v27 = vld [vmem:[#allocation5 + $0x330] sm:$0xff]  ;;  %v397_v32 = vpack.c.bf16 %v145_v25, %v141_v24 }
  0x5e   :  { %v461_v33 = vpack.c.bf16 %v147_v27, %v143_v26 }
  0x63   :  { %378 = vmatpush1.bf16.xpose.msra.mxu1 %v377_v36  ;;  %v149_v36 = vld [vmem:[#allocation5 + $0x340] sm:$0xff] }
  0x64   :  { %442 = vmatpush1.bf16.xpose.msra.mxu0 %v441_v37  ;;  %380 = vmatprep.subr.bf16.mxu1 %v379_v38  ;;  %v153_v37 = vld [vmem:[#allocation5 + $0x360] sm:$0xff]  ;;  %v151_v38 = vld [vmem:[#allocation5 + $0x350] sm:$0xff] }
  0x65   :  { %444 = vmatprep.subr.bf16.mxu0 %v443_v39  ;;  %v155_v39 = vld [vmem:[#allocation5 + $0x370] sm:$0xff]  ;;  %v401_v44 = vpack.c.bf16 %v153_v37, %v149_v36 }
  0x66   :  { %v465_v45 = vpack.c.bf16 %v155_v39, %v151_v38 }
  0x6b   :  { %382 = vmatpush1.bf16.xpose.msra.mxu1 %v381_v48  ;;  %v157_v48 = vld [vmem:[#allocation5 + $0x380] sm:$0xff] }
  0x6c   :  { %446 = vmatpush1.bf16.xpose.msra.mxu0 %v445_v49  ;;  %384 = vmatprep.subr.bf16.mxu1 %v383_v50  ;;  %v161_v49 = vld [vmem:[#allocation5 + $0x3a0] sm:$0xff]  ;;  %v159_v50 = vld [vmem:[#allocation5 + $0x390] sm:$0xff] }
  0x6d   :  { %448 = vmatprep.subr.bf16.mxu0 %v447_v51  ;;  %v163_v51 = vld [vmem:[#allocation5 + $0x3b0] sm:$0xff]  ;;  %v405_v56 = vpack.c.bf16 %v161_v49, %v157_v48 }
  0x6e   :  { %v469_v57 = vpack.c.bf16 %v163_v51, %v159_v50 }
  0x73   :  { %386 = vmatpush1.bf16.xpose.msra.mxu1 %v385_v60  ;;  %v165_v60 = vld [vmem:[#allocation5 + $0x3c0] sm:$0xff] }
  0x74   :  { %450 = vmatpush1.bf16.xpose.msra.mxu0 %v449_v61  ;;  %388 = vmatprep.subr.bf16.mxu1 %v387_v62  ;;  %v169_v61 = vld [vmem:[#allocation5 + $0x3e0] sm:$0xff]  ;;  %v167_v62 = vld [vmem:[#allocation5 + $0x3d0] sm:$0xff] }
  0x75   :  { %452 = vmatprep.subr.bf16.mxu0 %v451_v63  ;;  %v171_v63 = vld [vmem:[#allocation5 + $0x3f0] sm:$0xff]  ;;  %v409_v0 = vpack.c.bf16 %v169_v61, %v165_v60 }
  0x76   :  { %v473_v1 = vpack.c.bf16 %v171_v63, %v167_v62 }
  0x7b   :  { %390 = vmatpush1.bf16.xpose.msra.mxu1 %v389_v8  ;;  %v181_v8 = vsub.s32 1, %v176_v5 }
  0x7c   :  { %454 = vmatpush1.bf16.xpose.msra.mxu0 %v453_v9  ;;  %392 = vmatprep.subr.bf16.mxu1 %v391_v10  ;;  %v178_v9 = vrot.slane %v173_v7, %v177_v6 }
  0x7d   :  { %456 = vmatprep.subr.bf16.mxu0 %v455_v11  ;;  %v182_v10 = vrot.slane %v173_v7, %v181_v8 }
  0x83   :  { %394 = vmatpush1.bf16.xpose.msra.mxu1 %v393_v20 }
  0x84   :  { %458 = vmatpush1.bf16.xpose.msra.mxu0 %v457_v21  ;;  %396 = vmatprep.subr.bf16.mxu1 %v395_v22 }
  0x85   :  { %460 = vmatprep.subr.bf16.mxu0 %v459_v23 }
  0x8b   :  { %398 = vmatpush1.bf16.xpose.msra.mxu1 %v397_v32 }
  0x8c   :  { %462 = vmatpush1.bf16.xpose.msra.mxu0 %v461_v33  ;;  %400 = vmatprep.subr.bf16.mxu1 %v399_v34 }
  0x8d   :  { %464 = vmatprep.subr.bf16.mxu0 %v463_v35 }
  0x93   :  { %402 = vmatpush1.bf16.xpose.msra.mxu1 %v401_v44 }
  0x94   :  { %466 = vmatpush1.bf16.xpose.msra.mxu0 %v465_v45  ;;  %404 = vmatprep.subr.bf16.mxu1 %v403_v46 }
  0x95   :  { %468 = vmatprep.subr.bf16.mxu0 %v467_v47 }
  0x9b   :  { %406 = vmatpush1.bf16.xpose.msra.mxu1 %v405_v56 }
  0x9c   :  { %470 = vmatpush1.bf16.xpose.msra.mxu0 %v469_v57  ;;  %408 = vmatprep.subr.bf16.mxu1 %v407_v58 }
  0x9d   :  { %472 = vmatprep.subr.bf16.mxu0 %v471_v59 }
  0xa3   :  { %410 = vmatpush1.bf16.xpose.msra.mxu1 %v409_v0 }
  0xa4   :  { %474 = vmatpush1.bf16.xpose.msra.mxu0 %v473_v1 }
  0xaa   :  { %250 = vmatmul.mubr.f32.vlgmr.msra.gmra.mrb[0].mxu1 %v41_v2 }
  0xab   :  { %321 = vmatmul.mubr.f32.vlgmr.msra.gmra.mrb[0].mxu0 %v43_v3 }
 0x17d   :  { %v251_v11 = vpop.f32.mrb[0].mxu1 }
 0x17e   :  { %v252_v12 = vadd.f32 %v251_v11, %v178_v9  ;;  %v253_v13 = vpop.f32.mrb[1].mxu1  ;;  %v322_v14 = vpop.f32.mrb[0].mxu0 }
 0x17f   :  { %v254_v15 = vadd.f32 %v253_v13, %v182_v10  ;;  %v324_v16 = vpop.f32.mrb[1].mxu0 }
 0x180   :  { %v323_v17 = vadd.f32 %v322_v14, %v252_v12 }
 0x181   :  { %v325_v18 = vadd.f32 %v324_v16, %v254_v15 }
 0x182   :  { %484 = vtanh.f32 %v323_v17 }
 0x183   :  { %486 = vtanh.f32 %v325_v18 }
 0x18c   :  { %v485_v19 = vpop.eup %484 }
 0x18d   :  { %v487_v20 = vpop.eup %486  ;;  %329 = vst [vmem:[#allocation7] sm:$0xff] %v485_v19 }
 0x18e   :  { %330 = vst [vmem:[#allocation7 + $0x8] sm:$0xff] %v487_v20 }
 0x18f   :  { %543 = shalt.err (!%p540_p6)
}
 0x190   :  { %s544_s15 = scalar_lea.hbm %s634_s3, 256 }
 0x191   :  { %p545_p7 = scmp.ne.s32.totalorder %s634_s3, %s544_s15  ;;  %p548_p8 = scmp.lt.u32.totalorder %s544_s15, %s634_s3 }
 0x193   :  { %p550_p9 = pnand %p548_p8, %p545_p7 }
 0x195   :  { %553 = shalt.err (!%p550_p9)
}
 0x196   :  { %340 = dma.vmem_to_hbm [thread:$0]  %s338_s12, 256, %s634_s3, [#allocation4]  }
 0x197   :  { %558 = dma.done.wait [#allocation4], 256  }
 0x198   :  { %559 = vsyncadd [#allocation4], 4294967040 }
 0x199   :  { %344 = vsyncpa [#allocation3], 1 }
 0x19a   :  { %345 = vsyncpa [#allocation6], 1 }
 0x19b   :  { %346 = vsyncpa [#allocation4], 1 }

</bundles_post_ra>
